<compile_context>
chip_gen: v6e
topology: v6e:2x2x1
jax: 0.10.0
libtpu: 0.0.40
codegen_flags: <defaults>
</compile_context>

<pallas_src>
import jax
import jax.numpy as jnp
from jax.experimental import pallas as pl
from jax.experimental.pallas import tpu as pltpu

INPUT_DIM = 12
HIDDEN = 64
LANES = 128
MAX_TILE_B = 2048      # upper bound for the batch tile (multiple of 256)

# packed bf16 weight buffer (one VMEM-resident DMA): rows 0:12 = w1, rows 16:80 = w2
_W1_R0, _W1_R1 = 0, 12
_W2_R0, _W2_R1 = 16, 80          # 16-row aligned start (bf16 sublane packing)
PACK_ROWS = 80

# small f32 vector-parameter buffer: biases + w3 kept in f32 (no bf16 drift)
_B1_ROW, _B2_ROW, _W3_ROW, _B3_ROW = 0, 1, 2, 3
VEC_ROWS = 8


def _cdiv(a, b):
    return -(-a // b)


def _round_up(a, b):
    return _cdiv(a, b) * b


def _mlp_kernel(x_ref, w_ref, v_ref, o_ref):
    """One (tile_b, 12) batch tile through the fused 3-layer MLP.

    o_ref is a lane-dense (tile_b // 128, 128) f32 slab (batch on lanes for the store).
    """
    # cast in-kernel (removes the wrapper-side astype HBM pass)
    x = x_ref[...].astype(jnp.bfloat16)                       # (tile_b, 12)

    w1 = w_ref[_W1_R0:_W1_R1, :]                              # (12, 64) bf16
    w2 = w_ref[_W2_R0:_W2_R1, :]                              # (64, 64) bf16
    b1 = v_ref[_B1_ROW:_B1_ROW + 1, :]                        # (1, 64) f32
    b2 = v_ref[_B2_ROW:_B2_ROW + 1, :]                        # (1, 64) f32
    w3 = v_ref[_W3_ROW:_W3_ROW + 1, :]                        # (1, 64) f32 (== w3^T)
    b3 = v_ref[_B3_ROW:_B3_ROW + 1, 0:1]                      # (1, 1)  f32

    # layer 1 + ReLU (bf16 MXU inputs, f32 accumulation, f32 bias)
    h1 = jnp.dot(x, w1, preferred_element_type=jnp.float32)   # (tile_b, 64)
    h1 = jnp.maximum(h1 + b1, 0.0).astype(jnp.bfloat16)

    # layer 2 + ReLU
    h2 = jnp.dot(h1, w2, preferred_element_type=jnp.float32)  # (tile_b, 64)
    h2 = jnp.maximum(h2 + b2, 0.0)

    # layer 3 (64 -> 1) as broadcast-multiply + lane reduce on a batch-split view:
    # reshape (tile_b, 64) -> (tile_b//128, 128, 64) (major-dim split on a tile
    # boundary, layout-preserving), reduce the 64 lanes -> (tile_b//128, 128),
    # which stores lane-dense (no 1-lane masked vst / 1-lane writeback DMA).
    g = o_ref.shape[0]                                        # tile_b // 128
    h2r = h2.reshape(g, LANES, HIDDEN)
    out = jnp.sum(h2r * w3, axis=-1) + b3                     # (g, 128) f32
    o_ref[...] = out.astype(o_ref.dtype)


def pack_params(params):
    """Pack (w1, b1, w2, b2, w3, b3) into:
       * one bf16 (PACK_ROWS, HIDDEN) weight buffer  (w1 rows 0:12, w2 rows 16:80)
       * one f32  (VEC_ROWS,  HIDDEN) vector buffer  (b1, b2, w3^T, b3-broadcast rows)
    """
    w1, b1, w2, b2, w3, b3 = params
    w = jnp.zeros((PACK_ROWS, HIDDEN), jnp.float32)
    w = w.at[_W1_R0:_W1_R1, :].set(w1)
    w = w.at[_W2_R0:_W2_R1, :].set(w2)

    v = jnp.zeros((VEC_ROWS, HIDDEN), jnp.float32)
    v = v.at[_B1_ROW, :].set(b1.reshape(-1))
    v = v.at[_B2_ROW, :].set(b2.reshape(-1))
    v = v.at[_W3_ROW, :].set(w3.reshape(-1))
    v = v.at[_B3_ROW, :].set(jnp.full((HIDDEN,), b3.reshape(-1)[0]))
    return w.astype(jnp.bfloat16), v


def _choose_tile(batch, max_tile=MAX_TILE_B):
    # multiple of 256 (MXU-friendly, G multiple of 2), capped at max_tile, and chosen
    # so that B > 256 yields >= 2 grid tiles (v7x: both TensorCores get work).
    return max(256, min(max_tile, _round_up(_cdiv(batch, 2), 256)))


def transition_prediction_nn(x, w_packed, v_params, *, max_tile_b=MAX_TILE_B):
    """Forward pass. x: (B, 12) float32 (or bf16) -> (B, 1) float32."""
    B = x.shape[0]
    assert x.shape[1] == INPUT_DIM, x.shape

    tile_b = _choose_tile(B, max_tile_b)
    num_tiles = _cdiv(B, tile_b)          # final block may be partial: Pallas masks it;
    g = tile_b // LANES                   # garbage rows are independent and sliced off.

    out = pl.pallas_call(
        _mlp_kernel,
        out_shape=jax.ShapeDtypeStruct((num_tiles, g, LANES), jnp.float32),
        grid=(num_tiles,),
        in_specs=[
            # batch tile, software-pipelined over the grid (cast to bf16 in-kernel)
            pl.BlockSpec((tile_b, INPUT_DIM), lambda i: (i, 0)),
            # params: constant index_map -> DMA'd once, VMEM-resident across steps
            pl.BlockSpec((PACK_ROWS, HIDDEN), lambda i: (0, 0)),
            pl.BlockSpec((VEC_ROWS, HIDDEN), lambda i: (0, 0)),
        ],
        # lane-dense output slab; leading tile dim squeezed out of the kernel ref
        out_specs=pl.BlockSpec((None, g, LANES), lambda i: (i, 0, 0)),
        compiler_params=pltpu.CompilerParams(
            dimension_semantics=("parallel",),   # v7x: shard tiles across both TCs
        ),
    )(x, w_packed, v_params)

    # (num_tiles, g, 128) -> (num_tiles*tile_b, 1): same contiguous batch order (free),
    # then drop the padded tail rows of the final partial tile.
    return out.reshape(-1, 1)[:B]


def init_params(key, input_dim=INPUT_DIM, hidden=HIDDEN):
    """PyTorch-style init: U(-1/sqrt(fan_in), 1/sqrt(fan_in)); weights stored (in, out)."""
    def linear(k, fan_in, fan_out):
        kw, kb = jax.random.split(k)
        bound = 1.0 / jnp.sqrt(float(fan_in))
        w = jax.random.uniform(kw, (fan_in, fan_out), jnp.float32, -bound, bound)
        b = jax.random.uniform(kb, (1, fan_out), jnp.float32, -bound, bound)
        return w, b

    k1, k2, k3 = jax.random.split(key, 3)
    w1, b1 = linear(k1, input_dim, hidden)
    w2, b2 = linear(k2, hidden, hidden)
    w3, b3 = linear(k3, hidden, 1)
    return (w1, b1, w2, b2, w3, b3)


def reference_forward(x, params):
    """Pure-f32 reference of the PyTorch forward."""
    w1, b1, w2, b2, w3, b3 = params
    h1 = jnp.maximum(x @ w1 + b1, 0.0)
    h2 = jnp.maximum(h1 @ w2 + b2, 0.0)
    return h2 @ w3 + b3


def reference_forward_mixed(x, params):
    """Reference mirroring the kernel's precision (bf16 MXU inputs, f32 acc/biases/w3)."""
    w1, b1, w2, b2, w3, b3 = params
    bf = lambda a: a.astype(jnp.bfloat16)
    h1 = jnp.maximum(jnp.dot(bf(x), bf(w1), preferred_element_type=jnp.float32) + b1, 0.0)
    h2 = jnp.maximum(jnp.dot(bf(h1), bf(w2), preferred_element_type=jnp.float32) + b2, 0.0)
    return jnp.sum(h2 * w3.reshape(1, -1), axis=-1, keepdims=True) + b3.reshape(1, 1)


if __name__ == "__main__":
    key = jax.random.PRNGKey(0)
    k_param, k_x1, k_x2 = jax.random.split(key, 3)

    params = init_params(k_param)
    w_packed, v_params = pack_params(params)

    # small batch: single (partial) tile
    x_small = jax.random.normal(k_x1, (8, INPUT_DIM), dtype=jnp.float32)
    out_small = jax.block_until_ready(transition_prediction_nn(x_small, w_packed, v_params))
    assert out_small.shape == (8, 1), out_small.shape

    # multi-tile batch with a remainder: exercises the grid + partial-block path
    x_big = jax.random.normal(k_x2, (300, INPUT_DIM), dtype=jnp.float32)
    out_big = jax.block_until_ready(transition_prediction_nn(x_big, w_packed, v_params))
    assert out_big.shape == (300, 1), out_big.shape

    for x, out in ((x_small, out_small), (x_big, out_big)):
        ref_mirror = reference_forward_mixed(x, params)
        assert jnp.allclose(out, ref_mirror, atol=2e-3, rtol=2e-3), \
            "mismatch vs precision-mirrored reference"
        ref_f32 = reference_forward(x, params)
        assert jnp.allclose(out, ref_f32, atol=5e-2, rtol=5e-2), \
            "mismatch vs f32 reference"

    print("KERNEL_OK")
</pallas_src>

<mosaic_0001>
module attributes {stable_mosaic.version = 11 : i64} {
  func.func @_mlp_kernel(%arg0: i32, %arg1: memref<256x12xf32, #tpu.memory_space<vmem>>, %arg2: memref<80x64xbf16, #tpu.memory_space<vmem>>, %arg3: memref<8x64xf32, #tpu.memory_space<vmem>>, %arg4: memref<1x2x128xf32, #tpu.memory_space<vmem>>) attributes {dimension_semantics = [#tpu.dimension_semantics<parallel>], iteration_bounds = array<i64: 1>, scalar_prefetch = 0 : i64, scratch_operands = 0 : i64, tpu.core_type = #tpu.core_type<tc>, window_params = [{transform_indices = @transform_0, window_bounds = array<i64: 256, 12>}, {pipeline_mode = #tpu.pipeline_mode<synchronous>, transform_indices = @transform_1, window_bounds = array<i64: 80, 64>}, {pipeline_mode = #tpu.pipeline_mode<synchronous>, transform_indices = @transform_2, window_bounds = array<i64: 8, 64>}, {transform_indices = @transform_3, window_bounds = array<i64: 1, 2, 128>}]} {
    %c0 = arith.constant 0 : index
    %c0_0 = arith.constant 0 : index
    %0 = vector.load %arg1[%c0, %c0_0] : memref<256x12xf32, #tpu.memory_space<vmem>>, vector<256x12xf32>
    %1 = arith.truncf %0 : vector<256x12xf32> to vector<256x12xbf16>
    %c0_1 = arith.constant 0 : index
    %c0_2 = arith.constant 0 : index
    %2 = vector.load %arg2[%c0_1, %c0_2] : memref<80x64xbf16, #tpu.memory_space<vmem>>, vector<12x64xbf16>
    %c16 = arith.constant 16 : index
    %c0_3 = arith.constant 0 : index
    %3 = vector.load %arg2[%c16, %c0_3] : memref<80x64xbf16, #tpu.memory_space<vmem>>, vector<64x64xbf16>
    %c0_4 = arith.constant 0 : index
    %c0_5 = arith.constant 0 : index
    %4 = vector.load %arg3[%c0_4, %c0_5] : memref<8x64xf32, #tpu.memory_space<vmem>>, vector<1x64xf32>
    %c1 = arith.constant 1 : index
    %c0_6 = arith.constant 0 : index
    %5 = vector.load %arg3[%c1, %c0_6] : memref<8x64xf32, #tpu.memory_space<vmem>>, vector<1x64xf32>
    %c2 = arith.constant 2 : index
    %c0_7 = arith.constant 0 : index
    %6 = vector.load %arg3[%c2, %c0_7] : memref<8x64xf32, #tpu.memory_space<vmem>>, vector<1x64xf32>
    %c3 = arith.constant 3 : index
    %c0_8 = arith.constant 0 : index
    %7 = vector.load %arg3[%c3, %c0_8] : memref<8x64xf32, #tpu.memory_space<vmem>>, vector<1x1xf32>
    %cst = arith.constant dense<0.000000e+00> : vector<256x64xf32>
    %8 = tpu.matmul %1, %2, %cst {dimension_numbers = #tpu.dot_dimension_numbers<[1], [0], [0], [1], [0, 0, 1, 1], [], []>} : vector<256x12xbf16>, vector<12x64xbf16>, vector<256x64xf32> -> vector<256x64xf32>
    %9 = vector.broadcast %4 : vector<1x64xf32> to vector<256x64xf32>
    %10 = arith.addf %8, %9 : vector<256x64xf32>
    %cst_9 = arith.constant 0.000000e+00 : f32
    %11 = vector.broadcast %cst_9 : f32 to vector<256x64xf32>
    %12 = arith.maximumf %10, %11 : vector<256x64xf32>
    %13 = arith.truncf %12 : vector<256x64xf32> to vector<256x64xbf16>
    %cst_10 = arith.constant dense<0.000000e+00> : vector<256x64xf32>
    %14 = tpu.matmul %13, %3, %cst_10 {dimension_numbers = #tpu.dot_dimension_numbers<[1], [0], [0], [1], [0, 0, 1, 1], [], []>} : vector<256x64xbf16>, vector<64x64xbf16>, vector<256x64xf32> -> vector<256x64xf32>
    %15 = vector.broadcast %5 : vector<1x64xf32> to vector<256x64xf32>
    %16 = arith.addf %14, %15 : vector<256x64xf32>
    %cst_11 = arith.constant 0.000000e+00 : f32
    %17 = vector.broadcast %cst_11 : f32 to vector<256x64xf32>
    %18 = arith.maximumf %16, %17 : vector<256x64xf32>
    %19 = vector.shape_cast %18 : vector<256x64xf32> to vector<2x128x64xf32>
    %20 = vector.shape_cast %6 : vector<1x64xf32> to vector<1x1x64xf32>
    %21 = vector.broadcast %20 : vector<1x1x64xf32> to vector<2x128x64xf32>
    %22 = arith.mulf %19, %21 : vector<2x128x64xf32>
    %cst_12 = arith.constant dense<0.000000e+00> : vector<2x128xf32>
    %23 = vector.multi_reduction <add>, %22, %cst_12 [2] : vector<2x128x64xf32> to vector<2x128xf32>
    %24 = vector.broadcast %7 : vector<1x1xf32> to vector<2x128xf32>
    %25 = arith.addf %23, %24 : vector<2x128xf32>
    %c0_13 = arith.constant 0 : index
    %c0_14 = arith.constant 0 : index
    %c0_15 = arith.constant 0 : index
    %26 = vector.load %arg4[%c0_13, %c0_14, %c0_15] : memref<1x2x128xf32, #tpu.memory_space<vmem>>, vector<1x2x128xf32>
    %27 = vector.shape_cast %26 : vector<1x2x128xf32> to vector<2x128xf32>
    %28 = vector.shape_cast %25 : vector<2x128xf32> to vector<1x2x128xf32>
    tpu.vector_store %arg4[%c0_13, %c0_14, %c0_15], %28 {strides = array<i32>} : memref<1x2x128xf32, #tpu.memory_space<vmem>>, vector<1x2x128xf32>,
    return
  }
  func.func @transform_0(%arg0: i32) -> (i32, i32) {
    %c0_i32 = arith.constant 0 : i32
    %c0_i32_0 = arith.constant 0 : i32
    return %arg0, %c0_i32 : i32, i32
  }
  func.func @transform_1(%arg0: i32) -> (i32, i32) {
    %c0_i32 = arith.constant 0 : i32
    %c0_i32_0 = arith.constant 0 : i32
    %c0_i32_1 = arith.constant 0 : i32
    return %c0_i32, %c0_i32_0 : i32, i32
  }
  func.func @transform_2(%arg0: i32) -> (i32, i32) {
    %c0_i32 = arith.constant 0 : i32
    %c0_i32_0 = arith.constant 0 : i32
    %c0_i32_1 = arith.constant 0 : i32
    return %c0_i32, %c0_i32_0 : i32, i32
  }
  func.func @transform_3(%arg0: i32) -> (i32, i32, i32) {
    %c0_i32 = arith.constant 0 : i32
    %c0_i32_0 = arith.constant 0 : i32
    %c0_i32_1 = arith.constant 0 : i32
    return %arg0, %c0_i32, %c0_i32_0 : i32, i32, i32
  }
}

</mosaic_0001>

<bundles_post_ra>
// kernel: tpu_custom_call.1
= control target key start
LH: loop header
LB: loop body
LE: loop exit
PB: predicated region body
PF: predicated region fallthrough
CT: control target
= control target key end

     0   :  { %vm136_vm0 = vcmask 1045504   ;;  %vm87_vm1 = vcmask 97280   ;;  %s1654_s0 = inlined_call_operand.vmem [shape: f32[8,12], index: 0, kind: input, shape index: {}]   ;;  %s1655_s1 = inlined_call_operand.vmem [shape: bf16[80,64], index: 1, kind: input, shape index: {}]   ;;  %s1656_s2 = inlined_call_operand.vmem [shape: f32[8,64], index: 2, kind: input, shape index: {}]   ;;  %s1657_s3 = inlined_call_operand.hbm [shape: f32[1,2,128], index: 3, kind: output, shape index: {}]  }
   0x1   :  { %v1182_v0 = vld [vmem:[%s1655_s1] sm:$0x3f]   ;;  %v17_v2 = vld [vmem:[%s1654_s0 + $0x8] sm:$0xff]  ;;  %v18_v3 = vld [vmem:[%s1654_s0 + $0x10] sm:$0xff] }
   0x2   :  { %v16_v1 = vld [vmem:[%s1654_s0] sm:$0xff]  ;;  %1178 = vmatprep.subr.msk.bf16.mxu0 %vm136_vm0, %v1182_v0  ;;  %v138_v4 = vsel %vm136_vm0, %v1182_v0, 0  ;;  %v19_v6 = vld [vmem:[%s1654_s0 + $0x18] sm:$0xff]  ;;  %v21_v8 = vld [vmem:[%s1654_s0 + $0x28] sm:$0xff] }
   0x3   :  { %v48_v5 = vpack.c.bf16 %v17_v2, %v16_v1  ;;  %v20_v7 = vld [vmem:[%s1654_s0 + $0x20] sm:$0xff]  ;;  %1105 = vmatpush3.bf16.msra.mxu0 %v138_v4  ;;  %v49_v9 = vpack.c.bf16 %v19_v6, %v18_v3  ;;  %v22_v11 = vld [vmem:[%s1654_s0 + $0x30] sm:$0xff]  ;;  %v23_v12 = vld [vmem:[%s1654_s0 + $0x38] sm:$0xff] }
   0x4   :  { %v50_v10 = vpack.c.bf16 %v21_v8, %v20_v7  ;;  %v24_v13 = vld [vmem:[%s1654_s0 + $0x40] sm:$0xff]  ;;  %v25_v14 = vld [vmem:[%s1654_s0 + $0x48] sm:$0xff]  ;;  %v51_v15 = vpack.c.bf16 %v23_v12, %v22_v11 }
   0x5   :  { %1106 = vmatprep.mubr.msk.bf16.mxu0 %vm87_vm1, %v48_v5  ;;  %v52_v16 = vpack.c.bf16 %v25_v14, %v24_v13  ;;  %v1183_v17 = vld [vmem:[%s1655_s1 + $0x20] sm:$0xff]  }
   0x6   :  { %1107 = vmatmul.mubr.msk.bf16.vlgmr.msra.gmra.mxu0 %vm87_vm1, %v49_v9  ;;  %1138 = vmatprep.subr.bf16.mxu1 %v1183_v17 }
   0x7   :  { %1110 = vmatprep.mubr.msk.bf16.mxu0 %vm87_vm1, %v50_v10 }
   0xe   :  { %1111 = vmatmul.mubr.msk.bf16.gmra.mxu0 %vm87_vm1, %v51_v15 }
   0xf   :  { %8 = vsyncpa [#allocation3], 0  ;;  %1114 = vmatprep.mubr.msk.bf16.mxu0 %vm87_vm1, %v52_v16  ;;  %v26_v18 = vld [vmem:[%s1654_s0 + $0x50] sm:$0xff]  ;;  %v27_v19 = vld [vmem:[%s1654_s0 + $0x58] sm:$0xff]  ;;  %1139 = vmatpush3.bf16.msra.mxu1 %v1183_v17  ;;  %vm377_vm2 = vcmask 523264   ;;  %vm830_vm3 = vcmask 130112  }
  0x10   :  { %v28_v20 = vld [vmem:[%s1654_s0 + $0x60] sm:$0xff]  ;;  %v29_v21 = vld [vmem:[%s1654_s0 + $0x68] sm:$0xff]  ;;  %v53_v22 = vpack.c.bf16 %v27_v19, %v26_v18  ;;  %v30_v24 = vld [vmem:[%s1654_s0 + $0x70] sm:$0xff]  ;;  %vm837_vm4 = vcmask 195712   ;;  %vm844_vm5 = vcmask 261312   ;;  %vm851_vm6 = vcmask 326912  }
  0x11   :  { %v54_v23 = vpack.c.bf16 %v29_v21, %v28_v20  ;;  %v31_v25 = vld [vmem:[%s1654_s0 + $0x78] sm:$0xff]  ;;  %v32_v26 = vld [vmem:[%s1654_s0 + $0x80] sm:$0xff]  ;;  %v33_v27 = vld [vmem:[%s1654_s0 + $0x88] sm:$0xff]  ;;  %vm858_vm7 = vcmask 392512   ;;  %vm865_vm8 = vcmask 458112   ;;  %vm872_vm9 = vcmask 523712  }
  0x12   :  { %v55_v28 = vpack.c.bf16 %v31_v25, %v30_v24  ;;  %v56_v29 = vpack.c.bf16 %v33_v27, %v32_v26  ;;  %v34_v30 = vld [vmem:[%s1654_s0 + $0x90] sm:$0xff]  ;;  %v35_v31 = vld [vmem:[%s1654_s0 + $0x98] sm:$0xff]  ;;  %v36_v32 = vld [vmem:[%s1654_s0 + $0xa0] sm:$0xff]  ;;  %vm879_vm10 = vcmask 589312   ;;  %vm886_vm11 = vcmask 654912   ;;  %s1209_s11 = smov [#allocation2]  }
  0x13   :  { %v37_v33 = vld [vmem:[%s1654_s0 + $0xa8] sm:$0xff]  ;;  %v57_v34 = vpack.c.bf16 %v35_v31, %v34_v30  ;;  %v38_v36 = vld [vmem:[%s1654_s0 + $0xb0] sm:$0xff]  ;;  %v39_v37 = vld [vmem:[%s1654_s0 + $0xb8] sm:$0xff]  ;;  %vm893_vm12 = vcmask 720512   ;;  %vm900_vm13 = vcmask 786112   ;;  %vm907_vm14 = vcmask 851712  }
  0x14   :  { %v58_v35 = vpack.c.bf16 %v37_v33, %v36_v32  ;;  %v40_v38 = vld [vmem:[%s1654_s0 + $0xc0] sm:$0xff]  ;;  %v41_v39 = vld [vmem:[%s1654_s0 + $0xc8] sm:$0xff]  ;;  %v59_v40 = vpack.c.bf16 %v39_v37, %v38_v36  ;;  %v42_v42 = vld [vmem:[%s1654_s0 + $0xd0] sm:$0xff]  ;;  %vm914_vm15 = vcmask 917312   ;;  %vm921_vm0 = vcmask 982912   ;;  %s1019_s12 = sshll.u32 %s1209_s11, 4  ;;  %s1020_s12 = int_to_ptr.vmem [resolvable:$true] %s1019_s12 }
  0x15   :  { %v60_v41 = vpack.c.bf16 %v41_v39, %v40_v38  ;;  %v43_v43 = vld [vmem:[%s1654_s0 + $0xd8] sm:$0xff]  ;;  %v44_v44 = vld [vmem:[%s1654_s0 + $0xe0] sm:$0xff]  ;;  %v45_v45 = vld [vmem:[%s1654_s0 + $0xe8] sm:$0xff]  ;;  %s1187_s13 = scalar_lea.vmem %s1020_s12, 32  ;;  %p1192_p1 = scmp.lt.s32.totalorder %s1020_s12, %s1020_s12 }
  0x16   :  { %1115 = vmatmul.mubr.msk.bf16.gmra.mxu0 %vm87_vm1, %v53_v22  ;;  %v61_v46 = vpack.c.bf16 %v43_v43, %v42_v42  ;;  %v62_v47 = vpack.c.bf16 %v45_v45, %v44_v44  ;;  %v46_v48 = vld [vmem:[%s1654_s0 + $0xf0] sm:$0xff]  ;;  %v47_v49 = vld [vmem:[%s1654_s0 + $0xf8] sm:$0xff]  ;;  %v1186_v53 = vld [vmem:[%s1655_s1 + $0x8] sm:$0xff]   ;;  %p1188_p0 = scmp.ne.s32.totalorder %s1020_s12, %s1187_s13  ;;  %p1193_p2 = scmp.lt.s32.totalorder %s1187_s13, %s1187_s13 }
  0x17   :  { %1118 = vmatprep.mubr.msk.bf16.mxu0 %vm87_vm1, %v54_v23  ;;  %v63_v50 = vpack.c.bf16 %v47_v49, %v46_v48  ;;  %v1184_v51 = vld [vmem:[%s1655_s1 + $0x18] sm:$0xff]   ;;  %v1185_v52 = vld [vmem:[%s1655_s1 + $0x10] sm:$0xff]   ;;  %v1360_v56 = vld [vmem:[%s1656_s2] ss:$0 sm:$0xff] }
  0x18   :  { %1140 = vmatprep.subr.bf16.mxu1 %v1184_v51  ;;  %p1194_p3 = por %p1193_p2, %p1192_p1 }
  0x19   :  { %1141 = vmatpush3.bf16.msra.mxu1 %v1184_v51 }
  0x1a   :  { %1142 = vmatprep.subr.bf16.mxu1 %v1185_v52  ;;  %p1195_p4 = pnand %p1194_p3, %p1188_p0 }
  0x1d   :  { %1143 = vmatpush3.bf16.msra.mxu1 %v1185_v52 }
  0x1e   :  { %1119 = vmatmul.mubr.msk.bf16.gmra.mxu0 %vm87_vm1, %v55_v28  ;;  %1144 = vmatprep.subr.bf16.mxu1 %v1186_v53 }
  0x1f   :  { %1122 = vmatprep.mubr.msk.bf16.mxu0 %vm87_vm1, %v56_v29 }
  0x21   :  { %1145 = vmatpush3.bf16.msra.mxu1 %v1186_v53 }
  0x26   :  { %1123 = vmatmul.mubr.msk.bf16.gmra.mxu0 %vm87_vm1, %v57_v34 }
  0x27   :  { %1126 = vmatprep.mubr.msk.bf16.mxu0 %vm87_vm1, %v58_v35 }
  0x2e   :  { %1127 = vmatmul.mubr.msk.bf16.gmra.mxu0 %vm87_vm1, %v59_v40 }
  0x2f   :  { %1130 = vmatprep.mubr.msk.bf16.mxu0 %vm87_vm1, %v60_v41 }
  0x36   :  { %1131 = vmatmul.mubr.msk.bf16.gmra.mxu0 %vm87_vm1, %v61_v46 }
  0x37   :  { %1134 = vmatprep.mubr.msk.bf16.mxu0 %vm87_vm1, %v62_v47 }
  0x3e   :  { %1135 = vmatmul.mubr.msk.bf16.gmra.mxu0 %vm87_vm1, %v63_v50  ;;  %vm928_vm1 = vcmask 1048512  }
  0xc6   :  { %v1108_v54 = vpop.f32.mrf.mxu0 }
  0xc7   :  { %v183_v60 = vadd.f32 %v1108_v54, %v1360_v56 }
  0xc8   :  { %v174_v55 = vpop.f32.mrf.mxu0 }
  0xc9   :  { %v175_v58 = vadd.f32 %v1360_v56, %v174_v55  ;;  %v303_v3 = vmax.f32 %v183_v60, 0.0 }
  0xca   :  { %v1109_v57 = vpop.f32.mrf.mxu0 }
  0xcb   :  { %v186_v59 = vadd.f32 %v1109_v57, %v1360_v56  ;;  %v301_v1 = vmax.f32 %v175_v58, 0.0 }
  0xcc   :  { %v177_v61 = vpop.f32.mrf.mxu0 }
  0xcd   :  { %v178_v62 = vadd.f32 %v1360_v56, %v177_v61  ;;  %v304_v63 = vmax.f32 %v186_v59, 0.0 }
  0xce   :  { %v1112_v0 = vpop.f32.mrf.mxu0 }
  0xcf   :  { %v302_v2 = vmax.f32 %v178_v62, 0.0  ;;  %v334_v6 = vpack.c.bf16 %v304_v63, %v303_v3  ;;  %v199_v10 = vadd.f32 %v1112_v0, %v1360_v56 }
  0xd0   :  { %v190_v4 = vpop.f32.mrf.mxu0 }
  0xd1   :  { %v333_v5 = vpack.c.bf16 %v302_v2, %v301_v1  ;;  %v191_v8 = vadd.f32 %v1360_v56, %v190_v4  ;;  %v307_v17 = vmax.f32 %v199_v10, 0.0 }
  0xd2   :  { %v1113_v7 = vpop.f32.mrf.mxu0 }
  0xd3   :  { %v202_v9 = vadd.f32 %v1113_v7, %v1360_v56  ;;  %1146 = vmatprep.mubr.msk.bf16.mxu1 %vm377_vm2, %v333_v5  ;;  %v305_v15 = vmax.f32 %v191_v8, 0.0 }
  0xd4   :  { %v193_v11 = vpop.f32.mrf.mxu0  ;;  %1147 = vmatmul.mubr.msk.bf16.vlgmr.msra.gmra.mxu1 %vm377_vm2, %v334_v6 }
  0xd5   :  { %v194_v12 = vadd.f32 %v1360_v56, %v193_v11  ;;  %v308_v13 = vmax.f32 %v202_v9, 0.0 }
  0xd6   :  { %v1116_v14 = vpop.f32.mrf.mxu0 }
  0xd7   :  { %v306_v16 = vmax.f32 %v194_v12, 0.0  ;;  %v336_v20 = vpack.c.bf16 %v308_v13, %v307_v17  ;;  %v215_v24 = vadd.f32 %v1116_v14, %v1360_v56 }
  0xd8   :  { %v206_v18 = vpop.f32.mrf.mxu0 }
  0xd9   :  { %v335_v19 = vpack.c.bf16 %v306_v16, %v305_v15  ;;  %v207_v22 = vadd.f32 %v1360_v56, %v206_v18  ;;  %v311_v31 = vmax.f32 %v215_v24, 0.0 }
  0xda   :  { %v1117_v21 = vpop.f32.mrf.mxu0 }
  0xdb   :  { %v218_v23 = vadd.f32 %v1117_v21, %v1360_v56  ;;  %1150 = vmatprep.mubr.msk.bf16.mxu1 %vm377_vm2, %v335_v19  ;;  %v309_v29 = vmax.f32 %v207_v22, 0.0 }
  0xdc   :  { %v209_v25 = vpop.f32.mrf.mxu0  ;;  %1151 = vmatmul.mubr.msk.bf16.gmra.mxu1 %vm377_vm2, %v336_v20 }
  0xdd   :  { %v210_v26 = vadd.f32 %v1360_v56, %v209_v25  ;;  %v312_v27 = vmax.f32 %v218_v23, 0.0 }
  0xde   :  { %v1120_v28 = vpop.f32.mrf.mxu0 }
  0xdf   :  { %v310_v30 = vmax.f32 %v210_v26, 0.0  ;;  %v338_v34 = vpack.c.bf16 %v312_v27, %v311_v31  ;;  %v231_v38 = vadd.f32 %v1120_v28, %v1360_v56 }
  0xe0   :  { %v222_v32 = vpop.f32.mrf.mxu0 }
  0xe1   :  { %v337_v33 = vpack.c.bf16 %v310_v30, %v309_v29  ;;  %v223_v36 = vadd.f32 %v1360_v56, %v222_v32  ;;  %v315_v45 = vmax.f32 %v231_v38, 0.0 }
  0xe2   :  { %v1121_v35 = vpop.f32.mrf.mxu0 }
  0xe3   :  { %v234_v37 = vadd.f32 %v1121_v35, %v1360_v56  ;;  %1154 = vmatprep.mubr.msk.bf16.mxu1 %vm377_vm2, %v337_v33  ;;  %v313_v43 = vmax.f32 %v223_v36, 0.0 }
  0xe4   :  { %v225_v39 = vpop.f32.mrf.mxu0  ;;  %1155 = vmatmul.mubr.msk.bf16.gmra.mxu1 %vm377_vm2, %v338_v34 }
  0xe5   :  { %v226_v40 = vadd.f32 %v1360_v56, %v225_v39  ;;  %v316_v41 = vmax.f32 %v234_v37, 0.0 }
  0xe6   :  { %v1124_v42 = vpop.f32.mrf.mxu0 }
  0xe7   :  { %v314_v44 = vmax.f32 %v226_v40, 0.0  ;;  %v340_v48 = vpack.c.bf16 %v316_v41, %v315_v45  ;;  %v247_v52 = vadd.f32 %v1124_v42, %v1360_v56  ;;  %v77_v40 = vld [vmem:[%s1656_s2 + $0x3] sm:$0x1]  ;;  %v1416_v41 = vld [vmem:[%s1656_s2 + $0x1] ss:$0 sm:$0xff] }
  0xe8   :  { %v238_v46 = vpop.f32.mrf.mxu0  ;;  %1179 = vpush %v77_v40 }
  0xe9   :  { %v339_v47 = vpack.c.bf16 %v314_v44, %v313_v43  ;;  %v239_v50 = vadd.f32 %v1360_v56, %v238_v46  ;;  %v319_v60 = vmax.f32 %v247_v52, 0.0  ;;  %v1422_v44 = vld [vmem:[%s1656_s2 + $0x2] ss:$0 sm:$0xff] }
  0xea   :  { %v1125_v49 = vpop.f32.mrf.mxu0 }
  0xeb   :  { %v250_v51 = vadd.f32 %v1125_v49, %v1360_v56  ;;  %1158 = vmatprep.mubr.msk.bf16.mxu1 %vm377_vm2, %v339_v47  ;;  %v317_v58 = vmax.f32 %v239_v50, 0.0 }
  0xec   :  { %v241_v53 = vpop.f32.mrf.mxu0  ;;  %1159 = vmatmul.mubr.msk.bf16.gmra.mxu1 %vm377_vm2, %v340_v48 }
  0xed   :  { %v242_v54 = vadd.f32 %v1360_v56, %v241_v53  ;;  %v320_v55 = vmax.f32 %v250_v51, 0.0 }
  0xee   :  { %v1128_v57 = vpop.f32.mrf.mxu0 }
  0xef   :  { %v318_v59 = vmax.f32 %v242_v54, 0.0  ;;  %v263_v61 = vadd.f32 %v1128_v57, %v1360_v56  ;;  %v342_v1 = vpack.c.bf16 %v320_v55, %v319_v60 }
  0xf0   :  { %v254_v62 = vpop.f32.mrf.mxu0 }
  0xf1   :  { %v341_v63 = vpack.c.bf16 %v318_v59, %v317_v58  ;;  %v255_v0 = vadd.f32 %v1360_v56, %v254_v62  ;;  %v323_v4 = vmax.f32 %v263_v61, 0.0 }
  0xf2   :  { %v1129_v2 = vpop.f32.mrf.mxu0 }
  0xf3   :  { %v266_v3 = vadd.f32 %v1129_v2, %v1360_v56  ;;  %1162 = vmatprep.mubr.msk.bf16.mxu1 %vm377_vm2, %v341_v63  ;;  %v321_v6 = vmax.f32 %v255_v0, 0.0 }
  0xf4   :  { %v257_v5 = vpop.f32.mrf.mxu0  ;;  %1163 = vmatmul.mubr.msk.bf16.gmra.mxu1 %vm377_vm2, %v342_v1 }
  0xf5   :  { %v324_v7 = vmax.f32 %v266_v3, 0.0  ;;  %v258_v8 = vadd.f32 %v1360_v56, %v257_v5 }
  0xf6   :  { %v1132_v9 = vpop.f32.mrf.mxu0 }
  0xf7   :  { %v322_v10 = vmax.f32 %v258_v8, 0.0  ;;  %v344_v11 = vpack.c.bf16 %v324_v7, %v323_v4  ;;  %v279_v12 = vadd.f32 %v1132_v9, %v1360_v56 }
  0xf8   :  { %v270_v13 = vpop.f32.mrf.mxu0 }
  0xf9   :  { %v343_v14 = vpack.c.bf16 %v322_v10, %v321_v6  ;;  %v271_v15 = vadd.f32 %v1360_v56, %v270_v13  ;;  %v327_v18 = vmax.f32 %v279_v12, 0.0 }
  0xfa   :  { %v1133_v16 = vpop.f32.mrf.mxu0 }
  0xfb   :  { %1166 = vmatprep.mubr.msk.bf16.mxu1 %vm377_vm2, %v343_v14  ;;  %v282_v17 = vadd.f32 %v1133_v16, %v1360_v56  ;;  %v325_v20 = vmax.f32 %v271_v15, 0.0 }
  0xfc   :  { %1167 = vmatmul.mubr.msk.bf16.gmra.mxu1 %vm377_vm2, %v344_v11  ;;  %v273_v19 = vpop.f32.mrf.mxu0 }
  0xfd   :  { %v328_v21 = vmax.f32 %v282_v17, 0.0  ;;  %v274_v22 = vadd.f32 %v1360_v56, %v273_v19 }
  0xfe   :  { %v1136_v23 = vpop.f32.mrf.mxu0 }
  0xff   :  { %v326_v24 = vmax.f32 %v274_v22, 0.0  ;;  %v346_v25 = vpack.c.bf16 %v328_v21, %v327_v18  ;;  %v295_v26 = vadd.f32 %v1136_v23, %v1360_v56 }
 0x100   :  { %v286_v27 = vpop.f32.mrf.mxu0 }
 0x101   :  { %v345_v28 = vpack.c.bf16 %v326_v24, %v325_v20  ;;  %v287_v29 = vadd.f32 %v1360_v56, %v286_v27  ;;  %v331_v32 = vmax.f32 %v295_v26, 0.0 }
 0x102   :  { %v1137_v30 = vpop.f32.mrf.mxu0 }
 0x103   :  { %1170 = vmatprep.mubr.msk.bf16.mxu1 %vm377_vm2, %v345_v28  ;;  %v298_v31 = vadd.f32 %v1137_v30, %v1360_v56  ;;  %v329_v34 = vmax.f32 %v287_v29, 0.0 }
 0x104   :  { %1171 = vmatmul.mubr.msk.bf16.gmra.mxu1 %vm377_vm2, %v346_v25  ;;  %v289_v33 = vpop.f32.mrf.mxu0 }
 0x105   :  { %v332_v35 = vmax.f32 %v298_v31, 0.0  ;;  %v290_v36 = vadd.f32 %v1360_v56, %v289_v33 }
 0x107   :  { %v330_v37 = vmax.f32 %v290_v36, 0.0  ;;  %v348_v38 = vpack.c.bf16 %v332_v35, %v331_v32 }
 0x109   :  { %v347_v39 = vpack.c.bf16 %v330_v37, %v329_v34 }
 0x10b   :  { %1174 = vmatprep.mubr.msk.bf16.mxu1 %vm377_vm2, %v347_v39 }
 0x10c   :  { %1175 = vmatmul.mubr.msk.bf16.gmra.mxu1 %vm377_vm2, %v348_v38 }
 0x119   :  { %s1180_s2 = spop %1179 }
 0x194   :  { %v1148_v42 = vpop.f32.mrf.mxu1 }
 0x195   :  { %v469_v56 = vadd.f32 %v1148_v42, %v1416_v41 }
 0x196   :  { %v460_v43 = vpop.f32.mrf.mxu1 }
 0x197   :  { %v589_v45 = vmax.f32 %v469_v56, 0.0  ;;  %v461_v46 = vadd.f32 %v1416_v41, %v460_v43 }
 0x198   :  { %v1149_v47 = vpop.f32.mrf.mxu1 }
 0x199   :  { %v587_v48 = vmax.f32 %v461_v46, 0.0  ;;  %v472_v49 = vadd.f32 %v1149_v47, %v1416_v41  ;;  %v625_v50 = vmul.f32 %v1422_v44, %v589_v45 }
 0x19a   :  { %v463_v51 = vpop.f32.mrf.mxu1 }
 0x19b   :  { %v590_v52 = vmax.f32 %v472_v49, 0.0  ;;  %v464_v53 = vadd.f32 %v1416_v41, %v463_v51  ;;  %v661_v54 = vsel %vm377_vm2, %v625_v50, 0.0  ;;  %v623_v55 = vmul.f32 %v1422_v44, %v587_v48 }
 0x19c   :  { %662 = vadd.xlane.f32.xlu0 %v661_v54  ;;  %v1152_v57 = vpop.f32.mrf.mxu1 }
 0x19d   :  { %v588_v59 = vmax.f32 %v464_v53, 0.0  ;;  %v485_v60 = vadd.f32 %v1152_v57, %v1416_v41  ;;  %v655_v61 = vsel %vm377_vm2, %v623_v55, 0.0  ;;  %v626_v62 = vmul.f32 %v1422_v44, %v590_v52 }
 0x19e   :  { %v476_v58 = vpop.f32.mrf.mxu1 }
 0x19f   :  { %v593_v1 = vmax.f32 %v485_v60, 0.0  ;;  %v477_v2 = vadd.f32 %v1416_v41, %v476_v58  ;;  %v664_v3 = vsel %vm377_vm2, %v626_v62, 0.0  ;;  %v624_v4 = vmul.f32 %v1422_v44, %v588_v59 }
 0x1a0   :  { %v1153_v63 = vpop.f32.mrf.mxu1  ;;  %656 = vadd.xlane.f32.xlu0 %v655_v61 }
 0x1a1   :  { %v591_v7 = vmax.f32 %v477_v2, 0.0  ;;  %v488_v8 = vadd.f32 %v1153_v63, %v1416_v41  ;;  %v658_v9 = vsel %vm377_vm2, %v624_v4, 0.0  ;;  %v629_v10 = vmul.f32 %v1422_v44, %v593_v1 }
 0x1a2   :  { %v479_v0 = vpop.f32.mrf.mxu1 }
 0x1a3   :  { %v594_v13 = vmax.f32 %v488_v8, 0.0  ;;  %v480_v14 = vadd.f32 %v1416_v41, %v479_v0  ;;  %v673_v15 = vsel %vm377_vm2, %v629_v10, 0.0  ;;  %v627_v16 = vmul.f32 %v1422_v44, %v591_v7 }
 0x1a4   :  { %v1156_v5 = vpop.f32.mrf.mxu1  ;;  %665 = vadd.xlane.f32.xlu0 %v664_v3 }
 0x1a5   :  { %v501_v18 = vadd.f32 %v1156_v5, %v1416_v41  ;;  %v592_v20 = vmax.f32 %v480_v14, 0.0  ;;  %v667_v21 = vsel %vm377_vm2, %v627_v16, 0.0  ;;  %v630_v22 = vmul.f32 %v1422_v44, %v594_v13 }
 0x1a6   :  { %v492_v6 = vpop.f32.mrf.mxu1 }
 0x1a7   :  { %v597_v24 = vmax.f32 %v501_v18, 0.0  ;;  %v493_v25 = vadd.f32 %v1416_v41, %v492_v6  ;;  %v676_v27 = vsel %vm377_vm2, %v630_v22, 0.0  ;;  %v628_v28 = vmul.f32 %v1422_v44, %v592_v20 }
 0x1a8   :  { %v1157_v11 = vpop.f32.mrf.mxu1  ;;  %659 = vadd.xlane.f32.xlu0 %v658_v9 }
 0x1a9   :  { %v595_v31 = vmax.f32 %v493_v25, 0.0  ;;  %v504_v32 = vadd.f32 %v1157_v11, %v1416_v41  ;;  %v633_v34 = vmul.f32 %v1422_v44, %v597_v24  ;;  %v670_v37 = vsel %vm377_vm2, %v628_v28, 0.0 }
 0x1aa   :  { %v495_v12 = vpop.f32.mrf.mxu1 }
 0x1ab   :  { %v598_v56 = vmax.f32 %v504_v32, 0.0  ;;  %v496_v43 = vadd.f32 %v1416_v41, %v495_v12  ;;  %v685_v46 = vsel %vm377_vm2, %v633_v34, 0.0  ;;  %v631_v47 = vmul.f32 %v1422_v44, %v595_v31 }
 0x1ac   :  { %v1160_v17 = vpop.f32.mrf.mxu1  ;;  %674 = vadd.xlane.f32.xlu0 %v673_v15 }
 0x1ad   :  { %v517_v52 = vadd.f32 %v1160_v17, %v1416_v41  ;;  %v596_v54 = vmax.f32 %v496_v43, 0.0  ;;  %v679_v58 = vsel %vm377_vm2, %v631_v47, 0.0  ;;  %v634_v62 = vmul.f32 %v1422_v44, %v598_v56 }
 0x1ae   :  { %v508_v19 = vpop.f32.mrf.mxu1 }
 0x1af   :  { %v601_v63 = vmax.f32 %v517_v52, 0.0  ;;  %v509_v1 = vadd.f32 %v1416_v41, %v508_v19  ;;  %v632_v4 = vmul.f32 %v1422_v44, %v596_v54  ;;  %v688_v7 = vsel %vm377_vm2, %v634_v62, 0.0 }
 0x1b0   :  { %v1445_v23 = vpop.f32.mrf.mxu1  ;;  %668 = vadd.xlane.f32.xlu0 %v667_v21 }
 0x1b1   :  { %v637_v10 = vmul.f32 %v1422_v44, %v601_v63  ;;  %v599_v11 = vmax.f32 %v509_v1, 0.0  ;;  %v682_v15 = vsel %vm377_vm2, %v632_v4, 0.0  ;;  %v520_v22 = vadd.f32 %v1445_v23, %v1416_v41 }
 0x1b2   :  { %v511_v26 = vpop.f32.mrf.mxu1 }
 0x1b3   :  { %v512_v13 = vadd.f32 %v1416_v41, %v511_v26  ;;  %v697_v25 = vsel %vm377_vm2, %v637_v10, 0.0  ;;  %v635_v28 = vmul.f32 %v1422_v44, %v599_v11 }
 0x1b4   :  { %v1164_v29 = vpop.f32.mrf.mxu1  ;;  %677 = vadd.xlane.f32.xlu0 %v676_v27 }
 0x1b5   :  { %v533_v30 = vadd.f32 %v1164_v29, %v1416_v41 }
 0x1b6   :  { %v524_v33 = vpop.f32.mrf.mxu1 }
 0x1b7   :  { %v605_v35 = vmax.f32 %v533_v30, 0.0  ;;  %v525_v36 = vadd.f32 %v1416_v41, %v524_v33  ;;  %v600_v30 = vmax.f32 %v512_v13, 0.0 }
 0x1b8   :  { %v1165_v38 = vpop.f32.mrf.mxu1  ;;  %671 = vadd.xlane.f32.xlu0 %v670_v37 }
 0x1b9   :  { %v603_v39 = vmax.f32 %v525_v36, 0.0  ;;  %v536_v40 = vadd.f32 %v1165_v38, %v1416_v41  ;;  %v641_v42 = vmul.f32 %v1422_v44, %v605_v35  ;;  %v636_v47 = vmul.f32 %v1422_v44, %v600_v30 }
 0x1ba   :  { %v527_v45 = vpop.f32.mrf.mxu1 }
 0x1bb   :  { %v606_v48 = vmax.f32 %v536_v40, 0.0  ;;  %v528_v49 = vadd.f32 %v1416_v41, %v527_v45  ;;  %v709_v50 = vsel %vm377_vm2, %v641_v42, 0.0  ;;  %v639_v51 = vmul.f32 %v1422_v44, %v603_v39 }
 0x1bc   :  { %710 = vadd.xlane.f32.xlu1 %v709_v50  ;;  %v1168_v53 = vpop.f32.mrf.mxu1  ;;  %686 = vadd.xlane.f32.xlu0 %v685_v46  ;;  %v602_v39 = vmax.f32 %v520_v22, 0.0  ;;  %v691_v45 = vsel %vm377_vm2, %v635_v28, 0.0  ;;  %v819_v28 = vlaneseq }
 0x1bd   :  { %v549_v55 = vadd.f32 %v1168_v53, %v1416_v41  ;;  %v604_v59 = vmax.f32 %v528_v49, 0.0  ;;  %v703_v60 = vsel %vm377_vm2, %v639_v51, 0.0  ;;  %v642_v61 = vmul.f32 %v1422_v44, %v606_v48 }
 0x1be   :  { %v540_v57 = vpop.f32.mrf.mxu1 }
 0x1bf   :  { %v609_v2 = vmax.f32 %v549_v55, 0.0  ;;  %v541_v5 = vadd.f32 %v1416_v41, %v540_v57  ;;  %v712_v6 = vsel %vm377_vm2, %v642_v61, 0.0  ;;  %v640_v8 = vmul.f32 %v1422_v44, %v604_v59 }
 0x1c0   :  { %v1169_v0 = vpop.f32.mrf.mxu1  ;;  %704 = vadd.xlane.f32.xlu1 %v703_v60  ;;  %680 = vadd.xlane.f32.xlu0 %v679_v58  ;;  %v694_v59 = vsel %vm377_vm2, %v636_v47, 0.0  ;;  %v638_v60 = vmul.f32 %v1422_v44, %v602_v39 }
 0x1c1   :  { %v552_v14 = vadd.f32 %v1169_v0, %v1416_v41  ;;  %v645_v17 = vmul.f32 %v1422_v44, %v609_v2  ;;  %v607_v18 = vmax.f32 %v541_v5, 0.0  ;;  %v706_v20 = vsel %vm377_vm2, %v640_v8, 0.0 }
 0x1c2   :  { %v543_v3 = vpop.f32.mrf.mxu1  ;;  %v700_v5 = vsel %vm377_vm2, %v638_v60, 0.0 }
 0x1c3   :  { %v610_v31 = vmax.f32 %v552_v14, 0.0  ;;  %v544_v32 = vadd.f32 %v1416_v41, %v543_v3  ;;  %v721_v33 = vsel %vm377_vm2, %v645_v17, 0.0  ;;  %v643_v36 = vmul.f32 %v1422_v44, %v607_v18 }
 0x1c4   :  { %713 = vadd.xlane.f32.xlu1 %v712_v6  ;;  %689 = vadd.xlane.f32.xlu0 %v688_v7  ;;  %v1172_v9 = vpop.f32.mrf.mxu1 }
 0x1c5   :  { %v565_v12 = vadd.f32 %v1172_v9, %v1416_v41  ;;  %v608_v43 = vmax.f32 %v544_v32, 0.0  ;;  %v646_v46 = vmul.f32 %v1422_v44, %v610_v31  ;;  %v715_v49 = vsel %vm377_vm2, %v643_v36, 0.0 }
 0x1c6   :  { %v556_v16 = vpop.f32.mrf.mxu1  ;;  %v1532_v31 = vand.u32 127, %v819_v28 }
 0x1c7   :  { %v613_v19 = vmax.f32 %v565_v12, 0.0  ;;  %v557_v21 = vadd.f32 %v1416_v41, %v556_v16  ;;  %v724_v58 = vsel %vm377_vm2, %v646_v46, 0.0  ;;  %v644_v62 = vmul.f32 %v1422_v44, %v608_v43 }
 0x1c8   :  { %707 = vadd.xlane.f32.xlu1 %v706_v20  ;;  %683 = vadd.xlane.f32.xlu0 %v682_v15  ;;  %v1173_v24 = vpop.f32.mrf.mxu1  ;;  %v825_v32 = vadd.s32 4294967288, %v1532_v31  ;;  %v832_v36 = vadd.s32 4294967280, %v1532_v31  ;;  %v853_v47 = vadd.s32 4294967256, %v1532_v31  ;;  %v867_v60 = vadd.s32 4294967240, %v1532_v31 }
 0x1c9   :  { %v611_v26 = vmax.f32 %v557_v21, 0.0  ;;  %v568_v27 = vadd.f32 %v1173_v24, %v1416_v41  ;;  %v649_v29 = vmul.f32 %v1422_v44, %v613_v19  ;;  %v718_v4 = vsel %vm377_vm2, %v644_v62, 0.0 }
 0x1ca   :  { %v559_v34 = vpop.f32.mrf.mxu1 }
 0x1cb   :  { %v614_v23 = vmax.f32 %v568_v27, 0.0  ;;  %v560_v35 = vadd.f32 %v1416_v41, %v559_v34  ;;  %v647_v37 = vmul.f32 %v1422_v44, %v611_v26  ;;  %v733_v7 = vsel %vm377_vm2, %v649_v29, 0.0 }
 0x1cc   :  { %722 = vadd.xlane.f32.xlu1 %v721_v33  ;;  %698 = vadd.xlane.f32.xlu0 %v697_v25  ;;  %v1176_v38 = vpop.f32.mrf.mxu1 }
 0x1cd   :  { %v612_v40 = vmax.f32 %v560_v35, 0.0  ;;  %v581_v42 = vadd.f32 %v1176_v38, %v1416_v41  ;;  %v650_v56 = vmul.f32 %v1422_v44, %v614_v23  ;;  %v1539_v23 = vshrl.u32 %v819_v28, 7 }
 0x1ce   :  { %v572_v48 = vpop.f32.mrf.mxu1  ;;  %v1541_v35 = vstv %s1180_s2 }
 0x1cf   :  { %v617_v50 = vmax.f32 %v581_v42, 0.0  ;;  %v573_v51 = vadd.f32 %v1416_v41, %v572_v48  ;;  %v648_v52 = vmul.f32 %v1422_v44, %v612_v40  ;;  %v736_v8 = vsel %vm377_vm2, %v650_v56, 0.0 }
 0x1d0   :  { %716 = vadd.xlane.f32.xlu1 %v715_v49  ;;  %692 = vadd.xlane.f32.xlu0 %v691_v45  ;;  %v1177_v53 = vpop.f32.mrf.mxu1  ;;  %v828_v38 = vsub.s32 %v825_v32, %v1539_v23  ;;  %v860_v40 = vadd.s32 4294967248, %v1532_v31  ;;  %v846_v56 = vadd.s32 4294967264, %v1532_v31  ;;  %v823_v45 = vsub.s32 %v1532_v31, %v1539_v23 }
 0x1d1   :  { %v615_v54 = vmax.f32 %v573_v51, 0.0  ;;  %v584_v55 = vadd.f32 %v1177_v53, %v1416_v41  ;;  %v653_v57 = vmul.f32 %v1422_v44, %v617_v50  ;;  %v730_v9 = vsel %vm377_vm2, %v648_v52, 0.0 }
 0x1d2   :  { %v575_v61 = vpop.f32.mrf.mxu1  ;;  %v835_v49 = vsub.s32 %v832_v36, %v1539_v23  ;;  %v1558_v53 = vsub.s32 %v860_v40, %v1539_v23 }
 0x1d3   :  { %v618_v63 = vmax.f32 %v584_v55, 0.0  ;;  %v576_v0 = vadd.f32 %v1416_v41, %v575_v61  ;;  %v651_v1 = vmul.f32 %v1422_v44, %v615_v54  ;;  %v727_v41 = vsel %vm377_vm2, %v647_v37, 0.0 }
 0x1d4   :  { %725 = vadd.xlane.f32.xlu1 %v724_v58  ;;  %695 = vadd.xlane.f32.xlu0 %v694_v59  ;;  %v745_v10 = vsel %vm377_vm2, %v653_v57, 0.0  ;;  %v839_v37 = vadd.s32 4294967272, %v1532_v31  ;;  %v849_v57 = vsub.s32 %v846_v56, %v1539_v23  ;;  %v856_v61 = vsub.s32 %v853_v47, %v1539_v23 }
 0x1d5   :  { %v616_v2 = vmax.f32 %v576_v0, 0.0  ;;  %v654_v3 = vmul.f32 %v1422_v44, %v618_v63  ;;  %v739_v11 = vsel %vm377_vm2, %v651_v1, 0.0  ;;  %v888_v0 = vadd.s32 4294967216, %v1532_v31 }
 0x1d6   :  { %v842_v50 = vsub.s32 %v839_v37, %v1539_v23  ;;  %v895_v37 = vadd.s32 4294967208, %v1532_v31 }
 0x1d7   :  { %v652_v6 = vmul.f32 %v1422_v44, %v616_v2  ;;  %v748_v12 = vsel %vm377_vm2, %v654_v3, 0.0  ;;  %v874_v2 = vadd.s32 4294967232, %v1532_v31 }
 0x1d8   :  { %719 = vadd.xlane.f32.xlu1 %v718_v4  ;;  %701 = vadd.xlane.f32.xlu0 %v700_v5 }
 0x1d9   :  { %v742_v44 = vsel %vm377_vm2, %v652_v6, 0.0  ;;  %v877_v28 = vsub.s32 %v874_v2, %v1539_v23  ;;  %vm1009_vm2 = vcmask 1041409  }
 0x1dc   :  { %734 = vadd.xlane.f32.xlu1 %v733_v7 }
 0x1e0   :  { %728 = vadd.xlane.f32.xlu1 %v727_v41 }
 0x1e4   :  { %737 = vadd.xlane.f32.xlu1 %v736_v8 }
 0x1e8   :  { %731 = vadd.xlane.f32.xlu1 %v730_v9 }
 0x1ec   :  { %746 = vadd.xlane.f32.xlu1 %v745_v10 }
 0x1f0   :  { %740 = vadd.xlane.f32.xlu1 %v739_v11 }
 0x1f4   :  { %743 = vadd.xlane.f32.xlu1 %v742_v44  ;;  %v870_v44 = vsub.s32 %v867_v60, %v1539_v23 }
 0x1f8   :  { %749 = vadd.xlane.f32.xlu1 %v748_v12 }
 0x225   :  { %v663_v13 = vpop.xlane.xlu0 %662 }
 0x226   :  { %v757_v55 = vadd.f32 %v1541_v35, %v663_v13  ;;  %v881_v13 = vadd.s32 4294967224, %v1532_v31 }
 0x228   :  { %v836_v8 = vrot.slane %v757_v55, %v835_v49 }
 0x229   :  { %v657_v14 = vpop.xlane.xlu0 %656 }
 0x22a   :  { %v755_v46 = vadd.f32 %v1541_v35, %v657_v14 }
 0x22c   :  { %v824_v59 = vrot.slane %v755_v46, %v823_v45 }
 0x22d   :  { %v666_v15 = vpop.xlane.xlu0 %665 }
 0x22e   :  { %v758_v3 = vadd.f32 %v1541_v35, %v666_v15 }
 0x231   :  { %v660_v16 = vpop.xlane.xlu0 %659 }
 0x232   :  { %v756_v39 = vadd.f32 %v1541_v35, %v660_v16  ;;  %v1583_v16 = vsub.s32 %v888_v0, %v1539_v23 }
 0x234   :  { %v829_v52 = vrot.slane %v756_v39, %v828_v38 }
 0x235   :  { %v1522_v17 = vpop.xlane.xlu0 %674 }
 0x236   :  { %v831_v4 = vsel %vm830_vm3, %v829_v52, %v824_v59  ;;  %v909_v59 = vadd.s32 4294967192, %v1532_v31 }
 0x237   :  { %v838_v14 = vsel %vm837_vm4, %v836_v8, %v831_v4  ;;  %v923_v8 = vadd.s32 4294967176, %v1532_v31 }
 0x239   :  { %v669_v18 = vpop.xlane.xlu0 %668 }
 0x23a   :  { %v759_v63 = vadd.f32 %v1541_v35, %v669_v18  ;;  %v843_v18 = vrot.slane %v758_v3, %v842_v50 }
 0x23c   :  { %v850_v15 = vrot.slane %v759_v63, %v849_v57  ;;  %v845_v36 = vsel %vm844_vm5, %v843_v18, %v838_v14  ;;  %v916_v18 = vadd.s32 4294967184, %v1532_v31 }
 0x23d   :  { %v1524_v19 = vpop.xlane.xlu0 %677 }
 0x23e   :  { %v762_v56 = vadd.f32 %v1541_v35, %v1524_v19 }
 0x240   :  { %v871_v60 = vrot.slane %v762_v56, %v870_v44 }
 0x241   :  { %v672_v22 = vpop.xlane.xlu0 %671 }
 0x242   :  { %v760_v5 = vadd.f32 %v1541_v35, %v672_v22 }
 0x245   :  { %v711_v20 = vpop.xlane.xlu1 %710  ;;  %v1526_v25 = vpop.xlane.xlu0 %686 }
 0x246   :  { %v773_v62 = vadd.f32 %v1541_v35, %v711_v20  ;;  %v857_v20 = vrot.slane %v760_v5, %v856_v61  ;;  %v765_v2 = vadd.f32 %v1541_v35, %v1526_v25 }
 0x248   :  { %v942_v12 = vrot.slane %v773_v62, %v835_v49 }
 0x249   :  { %v705_v21 = vpop.xlane.xlu1 %704  ;;  %v1530_v29 = vpop.xlane.xlu0 %680 }
 0x24a   :  { %v771_v51 = vadd.f32 %v1541_v35, %v705_v21 }
 0x24c   :  { %v933_v1 = vrot.slane %v771_v51, %v823_v45 }
 0x24d   :  { %v714_v24 = vpop.xlane.xlu1 %713  ;;  %v1535_v33 = vpop.xlane.xlu0 %689 }
 0x24e   :  { %v774_v9 = vadd.f32 %v1541_v35, %v714_v24 }
 0x251   :  { %v708_v26 = vpop.xlane.xlu1 %707  ;;  %v684_v48 = vpop.xlane.xlu0 %683 }
 0x252   :  { %v772_v43 = vadd.f32 %v1541_v35, %v708_v26  ;;  %v761_v26 = vadd.f32 %v1541_v35, %v1522_v17  ;;  %v763_v17 = vadd.f32 %v1541_v35, %v1530_v29  ;;  %v764_v46 = vadd.f32 %v1541_v35, %v684_v48 }
 0x253   :  { %v902_v48 = vadd.s32 4294967200, %v1532_v31 }
 0x254   :  { %v937_v58 = vrot.slane %v772_v43, %v828_v38  ;;  %v884_v38 = vsub.s32 %v881_v13, %v1539_v23 }
 0x255   :  { %v1528_v27 = vpop.xlane.xlu1 %722  ;;  %v1573_v6 = vpop.xlane.xlu0 %698  ;;  %v905_v4 = vsub.s32 %v902_v48, %v1539_v23 }
 0x256   :  { %v938_v10 = vsel %vm830_vm3, %v937_v58, %v933_v1  ;;  %v777_v39 = vadd.f32 %v1541_v35, %v1528_v27  ;;  %v898_v58 = vsub.s32 %v895_v37, %v1539_v23 }
 0x257   :  { %v943_v21 = vsel %vm837_vm4, %v942_v12, %v938_v10 }
 0x258   :  { %v962_v52 = vrot.slane %v777_v39, %v1558_v53 }
 0x259   :  { %v717_v30 = vpop.xlane.xlu1 %716  ;;  %v693_v40 = vpop.xlane.xlu0 %692 }
 0x25a   :  { %v775_v7 = vadd.f32 %v1541_v35, %v717_v30  ;;  %v947_v30 = vrot.slane %v774_v9, %v842_v50  ;;  %v864_v50 = vrot.slane %v761_v26, %v1558_v53  ;;  %v767_v25 = vadd.f32 %v1541_v35, %v693_v40 }
 0x25b   :  { %v926_v26 = vsub.s32 %v923_v8, %v1539_v23  ;;  %v769_v40 = vadd.f32 %v1541_v35, %v1573_v6 }
 0x25c   :  { %v952_v22 = vrot.slane %v775_v7, %v849_v57  ;;  %v948_v43 = vsel %vm844_vm5, %v947_v30, %v943_v21  ;;  %v878_v57 = vrot.slane %v763_v17, %v877_v28  ;;  %v906_v30 = vrot.slane %v767_v25, %v905_v4 }
 0x25d   :  { %v1537_v34 = vpop.xlane.xlu1 %725 }
 0x25e   :  { %v953_v47 = vsel %vm851_vm6, %v952_v22, %v948_v43  ;;  %v778_v51 = vadd.f32 %v1541_v35, %v1537_v34  ;;  %v696_v34 = vpop.xlane.xlu0 %695 }
 0x260   :  { %v967_v1 = vrot.slane %v778_v51, %v870_v44 }
 0x261   :  { %v720_v42 = vpop.xlane.xlu1 %719 }
 0x262   :  { %v776_v11 = vadd.f32 %v1541_v35, %v720_v42  ;;  %v852_v42 = vsel %vm851_vm6, %v850_v15, %v845_v36  ;;  %v892_v15 = vrot.slane %v765_v2, %v1583_v16 }
 0x263   :  { %v859_v45 = vsel %vm858_vm7, %v857_v20, %v852_v42  ;;  %v702_v20 = vpop.xlane.xlu0 %701 }
 0x264   :  { %v957_v32 = vrot.slane %v776_v11, %v856_v61  ;;  %v866_v55 = vsel %vm865_vm8, %v864_v50, %v859_v45  ;;  %v885_v61 = vrot.slane %v764_v46, %v884_v38  ;;  %v912_v11 = vsub.s32 %v909_v59, %v1539_v23 }
 0x265   :  { %v1560_v54 = vpop.xlane.xlu1 %734  ;;  %v873_v3 = vsel %vm872_vm9, %v871_v60, %v866_v55 }
 0x266   :  { %v958_v19 = vsel %vm858_vm7, %v957_v32, %v953_v47  ;;  %v781_v5 = vadd.f32 %v1541_v35, %v1560_v54  ;;  %v880_v7 = vsel %vm879_vm10, %v878_v57, %v873_v3  ;;  %v768_v54 = vadd.f32 %v1541_v35, %v696_v34 }
 0x267   :  { %v963_v62 = vsel %vm865_vm8, %v962_v52, %v958_v19  ;;  %v887_v10 = vsel %vm886_vm11, %v885_v61, %v880_v7 }
 0x268   :  { %v968_v9 = vsel %vm872_vm9, %v967_v1, %v963_v62  ;;  %v982_v21 = vrot.slane %v781_v5, %v1583_v16  ;;  %v913_v37 = vrot.slane %v768_v54, %v912_v11  ;;  %v919_v16 = vsub.s32 %v916_v18, %v1539_v23 }
 0x269   :  { %v729_v41 = vpop.xlane.xlu1 %728 }
 0x26a   :  { %v779_v49 = vadd.f32 %v1541_v35, %v729_v41  ;;  %v766_v41 = vadd.f32 %v1541_v35, %v1535_v33  ;;  %v920_v6 = vrot.slane %v769_v40, %v919_v16 }
 0x26c   :  { %v972_v63 = vrot.slane %v779_v49, %v877_v28  ;;  %v899_v22 = vrot.slane %v766_v41, %v898_v58  ;;  %v894_v28 = vsel %vm893_vm12, %v892_v15, %v887_v10 }
 0x26d   :  { %v738_v24 = vpop.xlane.xlu1 %737 }
 0x26e   :  { %v973_v44 = vsel %vm879_vm10, %v972_v63, %v968_v9  ;;  %v782_v13 = vadd.f32 %v1541_v35, %v738_v24  ;;  %v901_v56 = vsel %vm900_vm13, %v899_v22, %v894_v28 }
 0x26f   :  { %v908_v45 = vsel %vm907_vm14, %v906_v30, %v901_v56 }
 0x270   :  { %v987_v39 = vrot.slane %v782_v13, %v898_v58  ;;  %v915_v49 = vsel %vm914_vm15, %v913_v37, %v908_v45 }
 0x271   :  { %v732_v27 = vpop.xlane.xlu1 %731 }
 0x272   :  { %v780_v29 = vadd.f32 %v1541_v35, %v732_v27 }
 0x274   :  { %v977_v53 = vrot.slane %v780_v29, %v884_v38  ;;  %v770_v38 = vadd.f32 %v1541_v35, %v702_v20  ;;  %v922_v29 = vsel %vm921_vm0, %v920_v6, %v915_v49 }
 0x275   :  { %v747_v0 = vpop.xlane.xlu1 %746 }
 0x276   :  { %v978_v14 = vsel %vm886_vm11, %v977_v53, %v973_v44  ;;  %v785_v42 = vadd.f32 %v1541_v35, %v747_v0  ;;  %v927_v27 = vrot.slane %v770_v38, %v926_v26 }
 0x277   :  { %v983_v24 = vsel %vm893_vm12, %v982_v21, %v978_v14 }
 0x278   :  { %v988_v17 = vsel %vm900_vm13, %v987_v39, %v983_v24  ;;  %v1002_v51 = vrot.slane %v785_v42, %v919_v16  ;;  %v929_v48 = vsel %vm928_vm1, %v927_v27, %v922_v29 }
 0x279   :  { %v741_v12 = vpop.xlane.xlu1 %740 }
 0x27a   :  { %v783_v33 = vadd.f32 %v1541_v35, %v741_v12 }
 0x27c   :  { %v992_v32 = vrot.slane %v783_v33, %v905_v4 }
 0x27d   :  { %v744_v36 = vpop.xlane.xlu1 %743 }
 0x27e   :  { %v784_v31 = vadd.f32 %v1541_v35, %v744_v36  ;;  %v993_v46 = vsel %vm907_vm14, %v992_v32, %v988_v17 }
 0x280   :  { %v997_v43 = vrot.slane %v784_v31, %v912_v11 }
 0x281   :  { %v750_v47 = vpop.xlane.xlu1 %749 }
 0x282   :  { %v998_v23 = vsel %vm914_vm15, %v997_v43, %v993_v46  ;;  %v786_v50 = vadd.f32 %v1541_v35, %v750_v47 }
 0x283   :  { %v1003_v52 = vsel %vm921_vm0, %v1002_v51, %v998_v23 }
 0x284   :  { %v1007_v19 = vrot.slane %v786_v50, %v926_v26 }
 0x286   :  { %v1008_v55 = vsel %vm928_vm1, %v1007_v19, %v1003_v52 }
 0x287   :  { %v1010_v57 = vsel %vm1009_vm2, %v1008_v55, %v929_v48 }
 0x288   :  { %1012 = vst [vmem:[#allocation2] sm:$0x3] %v1010_v57 }
 0x289   :  { %1198 = shalt.err (!%p1195_p4)
}
 0x28a   :  { %1022 = dma.vmem_to_hbm [thread:$0]  %s1020_s12, 32, %s1657_s3, [#allocation3]  }
 0x28b   :  { %1207 = dma.done.wait [#allocation3], 32  }
 0x28c   :  { %1208 = vsyncadd [#allocation3], 4294967264 }
 0x28d   :  { %1026 = vsyncpa [#allocation3], 1 }

</bundles_post_ra>
